<compile_context>
chip_gen: v5e
topology: v5e:2x2
jax: 0.10.0
libtpu: 0.0.40
codegen_flags: <defaults>
</compile_context>

<pallas_src>
import math
from typing import NamedTuple

import jax
import jax.numpy as jnp
from jax.experimental import pallas as pl
from jax.experimental.pallas import tpu as pltpu


def _round_up(x, m):
    return ((x + m - 1) // m) * m


def _choose_row_tile(n):
    """Row tile tm (multiple of 16).  Small graphs -> two row blocks so a v7x
    megacore has work on both TensorCores (costs at most 16 rows of padding)."""
    n_sub = _round_up(max(n, 16), 16)
    if n_sub <= 1024:
        if n_sub >= 32:
            return _round_up((n + 1) // 2, 16)
        return n_sub
    # Large graphs: 256/384/512-row tiles, minimizing padding (prefer larger tile).
    pad, neg_t = min((_round_up(n, t), -t) for t in (512, 384, 256))
    return -neg_t


def _choose_k_tile(n_pad_k):
    """Reduction tile tk: multiple of 128 that divides n_pad_k."""
    if n_pad_k <= 512:
        return n_pad_k
    for t in (512, 384, 256, 128):
        if n_pad_k % t == 0:
            return t
    return 128


def _choose_feature_tiles(fout):
    """fout padded to a multiple of 256 (fills the 256-wide MXU result dim);
    tn covers it in a single block whenever it comfortably fits VMEM, so the
    adj stream is read from HBM exactly once."""
    fout_pad = _round_up(fout, 256)
    if fout_pad <= 1024:
        return fout_pad, fout_pad
    for t in (1024, 512, 256):
        if fout_pad % t == 0:
            return fout_pad, t
    return fout_pad, 256


def _vmem_limit_bytes():
    """Derive the VMEM budget per chip generation (don't hard-code 48 MiB)."""
    try:
        cap = pltpu.get_tpu_info().vmem_capacity_bytes
    except Exception:
        cap = None
    if cap is None:
        return 48 * 1024 * 1024                      # safe on every generation
    if cap >= 128 * 1024 * 1024:                     # v5e / v6e
        return 100 * 1024 * 1024
    return min(48 * 1024 * 1024, (cap * 3) // 4)     # v7x: 64 MiB total


class AdjPlan(NamedTuple):
    """Adjacency cast to bf16 and padded once; reuse across layers / steps."""
    adj_bf16: jax.Array      # (n_pad_m, n_pad_k) bf16
    n: int
    n_pad_m: int
    n_pad_k: int
    tm: int
    tk: int


def prepare_adjacency(adj):
    """Hoist the adj bf16 cast + pad out of the per-forward path."""
    n = adj.shape[0]
    assert adj.shape == (n, n)
    tm = _choose_row_tile(n)
    n_pad_m = _round_up(n, tm)
    n_pad_k = _round_up(n, 128)
    tk = _choose_k_tile(n_pad_k)
    adj_p = jnp.pad(adj.astype(jnp.bfloat16),
                    ((0, n_pad_m - n), (0, n_pad_k - n)))
    return AdjPlan(adj_p, n, n_pad_m, n_pad_k, tm, tk)


# ---------------------------------------------------------------------------
# Pass 1: support = x @ W   (computed exactly once, emitted in bf16)
# ---------------------------------------------------------------------------
def _support_kernel(x_ref, w_ref, s_ref):
    s_ref[...] = jnp.dot(x_ref[...], w_ref[...],
                         preferred_element_type=jnp.float32).astype(s_ref.dtype)


# ---------------------------------------------------------------------------
# Pass 2: out = adj @ support + bias   (k-reduction, f32 VMEM accumulator)
# ---------------------------------------------------------------------------
def _aggregate_kernel(adj_ref, s_ref, b_ref, o_ref, acc_ref):
    k = pl.program_id(2)

    @pl.when(k == 0)
    def _():
        acc_ref[...] = jnp.zeros_like(acc_ref)

    # bf16 operands -> native MXU rate, f32 accumulation; no per-step casts.
    acc_ref[...] += jnp.dot(adj_ref[...], s_ref[...],
                            preferred_element_type=jnp.float32)

    @pl.when(k == pl.num_programs(2) - 1)
    def _():
        # Bias added exactly once, in the finalize branch of the k reduction.
        o_ref[...] = (acc_ref[...] + b_ref[...]).astype(o_ref.dtype)


def graph_convolution(x, adj, weight, bias=None):
    """Pallas GCN layer forward: adj @ (x @ weight) + bias.

    `adj` may be a raw (N, N) array or an AdjPlan from prepare_adjacency()
    (preferred: the cast/pad pass then happens once, not per forward).
    """
    n, fin = x.shape
    if not isinstance(adj, AdjPlan):
        adj = prepare_adjacency(adj)
    assert adj.n == n
    assert weight.shape[0] == fin
    fout = weight.shape[1]

    tm, tk = adj.tm, adj.tk
    n_pad_m, n_pad_k = adj.n_pad_m, adj.n_pad_k
    fout_pad, tn = _choose_feature_tiles(fout)
    vmem_limit = _vmem_limit_bytes()

    # bf16 MXU inputs; accumulation stays f32 inside the kernels.
    x_p = jnp.pad(x.astype(jnp.bfloat16), ((0, n_pad_k - n), (0, 0)))
    w_p = jnp.pad(weight.astype(jnp.bfloat16), ((0, 0), (0, fout_pad - fout)))
    if bias is None:
        b_p = jnp.zeros((1, fout_pad), dtype=jnp.float32)
    else:
        b_p = jnp.pad(bias.astype(jnp.float32).reshape(1, fout),
                      ((0, 0), (0, fout_pad - fout)))

    # --- Pass 1: support (n_pad_k, fout_pad) in bf16 -------------------------
    support = pl.pallas_call(
        _support_kernel,
        out_shape=jax.ShapeDtypeStruct((n_pad_k, fout_pad), jnp.bfloat16),
        grid_spec=pltpu.PrefetchScalarGridSpec(
            num_scalar_prefetch=0,
            grid=(n_pad_k // tk, fout_pad // tn),
            in_specs=[
                pl.BlockSpec((tk, fin), lambda r, j: (r, 0)),
                pl.BlockSpec((fin, tn), lambda r, j: (0, j)),
            ],
            out_specs=pl.BlockSpec((tk, tn), lambda r, j: (r, j)),
        ),
        compiler_params=pltpu.CompilerParams(
            dimension_semantics=("parallel", "parallel"),
            vmem_limit_bytes=vmem_limit,
        ),
    )(x_p, w_p)

    # --- Pass 2: out = adj @ support + bias ----------------------------------
    # TODO(synk): exploit block-sparsity of adj (scalar-prefetched nonzero-block
    # index list per row block) to skip all-zero (i, k) tiles on large graphs.
    grid = (n_pad_m // tm, fout_pad // tn, n_pad_k // tk)
    out_p = pl.pallas_call(
        _aggregate_kernel,
        out_shape=jax.ShapeDtypeStruct((n_pad_m, fout_pad), jnp.float32),
        grid_spec=pltpu.PrefetchScalarGridSpec(
            num_scalar_prefetch=0,
            grid=grid,
            in_specs=[
                pl.BlockSpec((tm, tk), lambda i, j, k: (i, k)),   # adj tile
                pl.BlockSpec((tk, tn), lambda i, j, k: (k, j)),   # support tile
                pl.BlockSpec((1, tn), lambda i, j, k: (0, j)),    # lane-dense bias
            ],
            out_specs=pl.BlockSpec((tm, tn), lambda i, j, k: (i, j)),
            scratch_shapes=[pltpu.VMEM((tm, tn), jnp.float32)],
        ),
        compiler_params=pltpu.CompilerParams(
            dimension_semantics=("parallel", "parallel", "arbitrary"),
            vmem_limit_bytes=vmem_limit,
        ),
    )(adj.adj_bf16, support, b_p)

    # Strip node / feature padding.
    return out_p[:n, :fout]


def init_params(key, in_features, out_features, bias=True):
    """Mirror of GraphConvolution.reset_parameters (uniform(-stdv, stdv))."""
    stdv = 1.0 / math.sqrt(out_features)
    kw, kb = jax.random.split(key)
    weight = jax.random.uniform(
        kw, (in_features, out_features), minval=-stdv, maxval=stdv,
        dtype=jnp.float32)
    b = None
    if bias:
        b = jax.random.uniform(
            kb, (out_features,), minval=-stdv, maxval=stdv, dtype=jnp.float32)
    return weight, b


if __name__ == "__main__":
    key = jax.random.PRNGKey(0)
    k_x, k_adj, k_params = jax.random.split(key, 3)

    # Small but non-trivial: exercises padding (300 -> 320 rows / 384 cols),
    # a 2-block parallel row axis, and the two-pass support/aggregate path.
    N = 300
    IN_FEATURES = 32
    OUT_FEATURES = 16

    # Node features.
    x = jax.random.normal(k_x, (N, IN_FEATURES), dtype=jnp.float32)

    # Symmetric row-normalized dense adjacency with self-loops
    # (torch.spmm semantics are just a matmul; sparsity is a storage detail).
    a_raw = (jax.random.uniform(k_adj, (N, N)) < 0.05).astype(jnp.float32)
    a_sym = jnp.maximum(a_raw, a_raw.T) + jnp.eye(N, dtype=jnp.float32)
    adj = a_sym / jnp.sum(a_sym, axis=1, keepdims=True)

    weight, bias = init_params(k_params, IN_FEATURES, OUT_FEATURES, bias=True)

    # Cast/pad the adjacency exactly once; reuse across layers / steps.
    adj_prep = prepare_adjacency(adj)

    out = graph_convolution(x, adj_prep, weight, bias)
    out = jax.block_until_ready(out)
    assert out.shape == (N, OUT_FEATURES)

    # Reference mirroring the kernel's bf16-input / f32-accumulate math.
    xb = x.astype(jnp.bfloat16).astype(jnp.float32)
    ab = adj.astype(jnp.bfloat16).astype(jnp.float32)
    wb = weight.astype(jnp.bfloat16).astype(jnp.float32)
    support = (xb @ wb).astype(jnp.bfloat16).astype(jnp.float32)
    ref_bf16 = ab @ support + bias[None, :]
    assert jnp.allclose(out, ref_bf16, atol=2e-3, rtol=2e-3)

    # Full-precision sanity check (loose tolerance: bf16 MXU inputs).
    ref_f32 = adj @ (x @ weight) + bias[None, :]
    assert jnp.allclose(out, ref_f32, atol=5e-2, rtol=5e-2)

    print("KERNEL_OK")
</pallas_src>

<mosaic_0001>
module attributes {stable_mosaic.version = 11 : i64} {
  func.func @_support_kernel(%arg0: i32, %arg1: i32, %arg2: memref<384x32xbf16, #tpu.memory_space<vmem>>, %arg3: memref<32x256xbf16, #tpu.memory_space<vmem>>, %arg4: memref<384x256xbf16, #tpu.memory_space<vmem>>) attributes {dimension_semantics = [#tpu.dimension_semantics<parallel>, #tpu.dimension_semantics<parallel>], iteration_bounds = array<i64: 1, 1>, scalar_prefetch = 0 : i64, scratch_operands = 0 : i64, tpu.core_type = #tpu.core_type<tc>, window_params = [{transform_indices = @transform_0, window_bounds = array<i64: 384, 32>}, {transform_indices = @transform_1, window_bounds = array<i64: 32, 256>}, {transform_indices = @transform_2, window_bounds = array<i64: 384, 256>}]} {
    %c0 = arith.constant 0 : index
    %c0_0 = arith.constant 0 : index
    %0 = vector.load %arg2[%c0, %c0_0] : memref<384x32xbf16, #tpu.memory_space<vmem>>, vector<384x32xbf16>
    %c0_1 = arith.constant 0 : index
    %c0_2 = arith.constant 0 : index
    %1 = vector.load %arg3[%c0_1, %c0_2] : memref<32x256xbf16, #tpu.memory_space<vmem>>, vector<32x256xbf16>
    %cst = arith.constant dense<0.000000e+00> : vector<384x256xf32>
    %2 = tpu.matmul %0, %1, %cst {dimension_numbers = #tpu.dot_dimension_numbers<[1], [0], [0], [1], [0, 0, 1, 1], [], []>} : vector<384x32xbf16>, vector<32x256xbf16>, vector<384x256xf32> -> vector<384x256xf32>
    %3 = arith.truncf %2 : vector<384x256xf32> to vector<384x256xbf16>
    %c0_3 = arith.constant 0 : index
    %c0_4 = arith.constant 0 : index
    %4 = vector.load %arg4[%c0_3, %c0_4] : memref<384x256xbf16, #tpu.memory_space<vmem>>, vector<384x256xbf16>
    tpu.vector_store %arg4[%c0_3, %c0_4], %3 {strides = array<i32>} : memref<384x256xbf16, #tpu.memory_space<vmem>>, vector<384x256xbf16>,
    return
  }
  func.func @transform_0(%arg0: i32, %arg1: i32) -> (i32, i32) {
    %c0_i32 = arith.constant 0 : i32
    %c0_i32_0 = arith.constant 0 : i32
    return %arg0, %c0_i32 : i32, i32
  }
  func.func @transform_1(%arg0: i32, %arg1: i32) -> (i32, i32) {
    %c0_i32 = arith.constant 0 : i32
    %c0_i32_0 = arith.constant 0 : i32
    return %c0_i32, %arg1 : i32, i32
  }
  func.func @transform_2(%arg0: i32, %arg1: i32) -> (i32, i32) {
    %c0_i32 = arith.constant 0 : i32
    return %arg0, %arg1 : i32, i32
  }
}

</mosaic_0001>

<bundles_post_ra>
// kernel: tpu_custom_call.1
= control target key start
LH: loop header
LB: loop body
LE: loop exit
PB: predicated region body
PF: predicated region fallthrough
CT: control target
= control target key end

     0   :  { %s1036_s0 = inlined_call_operand.vmem [shape: bf16[384,32], index: 0, kind: input, shape index: {}]   ;;  %s1037_s1 = inlined_call_operand.vmem [shape: bf16[32,256], index: 1, kind: input, shape index: {}]   ;;  %s1038_s2 = inlined_call_operand.hbm [shape: bf16[384,256], index: 2, kind: output, shape index: {}]  }
   0x1   :  { %v756_v0 = vld [vmem:[%s1037_s1 + $0x10] sm:$0xf]  ;;  %v837_v1 = vld [vmem:[%s1037_s1 + $0x14] sm:$0xf0]  ;;  %v836_v2 = vld [vmem:[%s1037_s1 + $0x14] sm:$0xf] }
   0x2   :  { %v757_v3 = vor.u32 %v837_v1, %v756_v0  ;;  %v758_v4 = vld [vmem:[%s1037_s1 + $0x18] sm:$0xf0]  ;;  %v748_v5 = vld [vmem:[%s1037_s1] sm:$0xf]  ;;  %v835_v6 = vld [vmem:[%s1037_s1 + $0x4] sm:$0xf0] }
   0x3   :  { %v761_v7 = vor.u32 %v836_v2, %v758_v4  ;;  %v834_v8 = vld [vmem:[%s1037_s1 + $0x4] sm:$0xf]  ;;  %v750_v9 = vld [vmem:[%s1037_s1 + $0x8] sm:$0xf0]  ;;  %v749_v10 = vor.u32 %v835_v6, %v748_v5 }
   0x4   :  { %284 = vmatpush.bf16.msra.mxu0 %v757_v3  ;;  %838 = vmatpush.bf16.msra.mxu2 %v757_v3  ;;  %v753_v11 = vor.u32 %v834_v8, %v750_v9 }
   0x5   :  { %413 = vmatpush.bf16.msra.mxu1 %v761_v7  ;;  %840 = vmatpush.bf16.msra.mxu3 %v761_v7 }
   0x6   :  { %7 = vsyncpa [#allocation3], 0  ;;  %v810_v12 = vld [vmem:[%s1036_s0] sm:$0xff]  ;;  %vm205_vm0 = vcmask 261120   ;;  %v811_v14 = vld [vmem:[%s1036_s0 + $0x8] sm:$0xff]  ;;  %s638_s18 = sshll.u32 %s1038_s2, 4  ;;  %s639_s18 = int_to_ptr.hbm [resolvable:$true] %s638_s18 }
   0x7   :  { %v822_v13 = vld [vmem:[%s1036_s0 + $0x60] sm:$0xff]  ;;  %v823_v15 = vld [vmem:[%s1036_s0 + $0x68] sm:$0xff]  ;;  %v812_v16 = vld [vmem:[%s1036_s0 + $0x10] sm:$0xff]  ;;  %s872_s19 = smov 128   ;;  %s873_s20 = smov 8  }
   0x8   :  { %285 = vmatpush.bf16.msra.mxu0 %v749_v10  ;;  %839 = vmatpush.bf16.msra.mxu2 %v749_v10  ;;  %v824_v17 = vld [vmem:[%s1036_s0 + $0x70] sm:$0xff]  ;;  %v813_v18 = vld [vmem:[%s1036_s0 + $0x18] sm:$0xff]  ;;  %v814_v20 = vld [vmem:[%s1036_s0 + $0x20] sm:$0xff] }
   0x9   :  { %414 = vmatpush.bf16.msra.mxu1 %v753_v11  ;;  %841 = vmatpush.bf16.msra.mxu3 %v753_v11  ;;  %v825_v19 = vld [vmem:[%s1036_s0 + $0x78] sm:$0xff]  ;;  %v826_v21 = vld [vmem:[%s1036_s0 + $0x80] sm:$0xff]  ;;  %v815_v22 = vld [vmem:[%s1036_s0 + $0x28] sm:$0xff] }
   0xa   :  { %v827_v23 = vld [vmem:[%s1036_s0 + $0x88] sm:$0xff]  ;;  %v816_v24 = vld [vmem:[%s1036_s0 + $0x30] sm:$0xff]  ;;  %v817_v26 = vld [vmem:[%s1036_s0 + $0x38] sm:$0xff] }
   0xb   :  { %762 = vmatmul.msk.bf16.vlgmr.msra.gmra.mxu0 %vm205_vm0, %v810_v12  ;;  %774 = vmatmul.msk.bf16.vlgmr.msra.gmra.mxu2 %vm205_vm0, %v822_v13  ;;  %v828_v25 = vld [vmem:[%s1036_s0 + $0x90] sm:$0xff]  ;;  %v829_v27 = vld [vmem:[%s1036_s0 + $0x98] sm:$0xff]  ;;  %v818_v28 = vld [vmem:[%s1036_s0 + $0x40] sm:$0xff] }
   0xc   :  { %786 = vmatmul.msk.bf16.vlgmr.msra.gmra.mxu1 %vm205_vm0, %v810_v12  ;;  %798 = vmatmul.msk.bf16.vlgmr.msra.gmra.mxu3 %vm205_vm0, %v822_v13  ;;  %v830_v29 = vld [vmem:[%s1036_s0 + $0xa0] sm:$0xff]  ;;  %v819_v41 = vld [vmem:[%s1036_s0 + $0x48] sm:$0xff]  ;;  %v820_v55 = vld [vmem:[%s1036_s0 + $0x50] sm:$0xff] }
   0xd   :  { %v831_v42 = vld [vmem:[%s1036_s0 + $0xa8] sm:$0xff]  ;;  %v832_v56 = vld [vmem:[%s1036_s0 + $0xb0] sm:$0xff]  ;;  %v821_v5 = vld [vmem:[%s1036_s0 + $0x58] sm:$0xff] }
   0xe   :  { %v833_v6 = vld [vmem:[%s1036_s0 + $0xb8] sm:$0xff]  ;;  %s871_s0 = smov [#allocation2]  }
   0xf   :  { %s636_s15 = sshll.u32 %s871_s0, 4  ;;  %s637_s15 = int_to_ptr.vmem [resolvable:$true] %s636_s15 }
  0x1b   :  { %763 = vmatmul.msk.bf16.gmra.mxu0 %vm205_vm0, %v811_v14  ;;  %775 = vmatmul.msk.bf16.gmra.mxu2 %vm205_vm0, %v823_v15 }
  0x1c   :  { %787 = vmatmul.msk.bf16.gmra.mxu1 %vm205_vm0, %v811_v14  ;;  %799 = vmatmul.msk.bf16.gmra.mxu3 %vm205_vm0, %v823_v15 }
  0x2b   :  { %764 = vmatmul.msk.bf16.gmra.mxu0 %vm205_vm0, %v812_v16  ;;  %776 = vmatmul.msk.bf16.gmra.mxu2 %vm205_vm0, %v824_v17 }
  0x2c   :  { %788 = vmatmul.msk.bf16.gmra.mxu1 %vm205_vm0, %v812_v16  ;;  %800 = vmatmul.msk.bf16.gmra.mxu3 %vm205_vm0, %v824_v17 }
  0x3b   :  { %765 = vmatmul.msk.bf16.gmra.mxu0 %vm205_vm0, %v813_v18  ;;  %777 = vmatmul.msk.bf16.gmra.mxu2 %vm205_vm0, %v825_v19 }
  0x3c   :  { %789 = vmatmul.msk.bf16.gmra.mxu1 %vm205_vm0, %v813_v18  ;;  %801 = vmatmul.msk.bf16.gmra.mxu3 %vm205_vm0, %v825_v19 }
  0x4b   :  { %766 = vmatmul.msk.bf16.gmra.mxu0 %vm205_vm0, %v814_v20  ;;  %778 = vmatmul.msk.bf16.gmra.mxu2 %vm205_vm0, %v826_v21 }
  0x4c   :  { %790 = vmatmul.msk.bf16.gmra.mxu1 %vm205_vm0, %v814_v20  ;;  %802 = vmatmul.msk.bf16.gmra.mxu3 %vm205_vm0, %v826_v21 }
  0x5b   :  { %767 = vmatmul.msk.bf16.gmra.mxu0 %vm205_vm0, %v815_v22  ;;  %779 = vmatmul.msk.bf16.gmra.mxu2 %vm205_vm0, %v827_v23 }
  0x5c   :  { %791 = vmatmul.msk.bf16.gmra.mxu1 %vm205_vm0, %v815_v22  ;;  %803 = vmatmul.msk.bf16.gmra.mxu3 %vm205_vm0, %v827_v23 }
  0x6b   :  { %768 = vmatmul.msk.bf16.gmra.mxu0 %vm205_vm0, %v816_v24  ;;  %780 = vmatmul.msk.bf16.gmra.mxu2 %vm205_vm0, %v828_v25 }
  0x6c   :  { %792 = vmatmul.msk.bf16.gmra.mxu1 %vm205_vm0, %v816_v24  ;;  %804 = vmatmul.msk.bf16.gmra.mxu3 %vm205_vm0, %v828_v25 }
  0x7b   :  { %769 = vmatmul.msk.bf16.gmra.mxu0 %vm205_vm0, %v817_v26  ;;  %781 = vmatmul.msk.bf16.gmra.mxu2 %vm205_vm0, %v829_v27 }
  0x7c   :  { %793 = vmatmul.msk.bf16.gmra.mxu1 %vm205_vm0, %v817_v26  ;;  %805 = vmatmul.msk.bf16.gmra.mxu3 %vm205_vm0, %v829_v27 }
  0x88   :  { %v287_v30 = vpop.f32.mrf.mxu0 }
  0x89   :  { %v416_v31 = vpop.f32.mrf.mxu1 }
  0x8a   :  { %v536_v32 = vpack.c.bf16 %v416_v31, %v287_v30 }
  0x8b   :  { %770 = vmatmul.msk.bf16.gmra.mxu0 %vm205_vm0, %v818_v28  ;;  %782 = vmatmul.msk.bf16.gmra.mxu2 %vm205_vm0, %v830_v29 }
  0x8c   :  { %584 = vst [vmem:[#allocation2] sm:$0xff] %v536_v32  ;;  %794 = vmatmul.msk.bf16.gmra.mxu1 %vm205_vm0, %v818_v28  ;;  %806 = vmatmul.msk.bf16.gmra.mxu3 %vm205_vm0, %v830_v29 }
  0x8e   :  { %v347_v33 = vpop.f32.mrf.mxu2 }
  0x8f   :  { %v476_v34 = vpop.f32.mrf.mxu3 }
  0x90   :  { %v560_v35 = vpack.c.bf16 %v476_v34, %v347_v33  ;;  %v289_v36 = vpop.f32.mrf.mxu0 }
  0x91   :  { %v418_v37 = vpop.f32.mrf.mxu1 }
  0x92   :  { %608 = vst [vmem:[#allocation2 + $0xc0] sm:$0xff] %v560_v35  ;;  %v537_v38 = vpack.c.bf16 %v418_v37, %v289_v36 }
  0x94   :  { %585 = vst [vmem:[#allocation2 + $0x8] sm:$0xff] %v537_v38 }
  0x96   :  { %v349_v39 = vpop.f32.mrf.mxu2 }
  0x97   :  { %v478_v40 = vpop.f32.mrf.mxu3 }
  0x98   :  { %v561_v43 = vpack.c.bf16 %v478_v40, %v349_v39  ;;  %v292_v44 = vpop.f32.mrf.mxu0 }
  0x99   :  { %v421_v45 = vpop.f32.mrf.mxu1 }
  0x9a   :  { %609 = vst [vmem:[#allocation2 + $0xc8] sm:$0xff] %v561_v43  ;;  %v538_v46 = vpack.c.bf16 %v421_v45, %v292_v44 }
  0x9b   :  { %771 = vmatmul.msk.bf16.gmra.mxu0 %vm205_vm0, %v819_v41  ;;  %783 = vmatmul.msk.bf16.gmra.mxu2 %vm205_vm0, %v831_v42 }
  0x9c   :  { %586 = vst [vmem:[#allocation2 + $0x10] sm:$0xff] %v538_v46  ;;  %795 = vmatmul.msk.bf16.gmra.mxu1 %vm205_vm0, %v819_v41  ;;  %807 = vmatmul.msk.bf16.gmra.mxu3 %vm205_vm0, %v831_v42 }
  0x9e   :  { %v352_v47 = vpop.f32.mrf.mxu2 }
  0x9f   :  { %v481_v48 = vpop.f32.mrf.mxu3 }
  0xa0   :  { %v562_v49 = vpack.c.bf16 %v481_v48, %v352_v47  ;;  %v294_v50 = vpop.f32.mrf.mxu0 }
  0xa1   :  { %v423_v51 = vpop.f32.mrf.mxu1 }
  0xa2   :  { %610 = vst [vmem:[#allocation2 + $0xd0] sm:$0xff] %v562_v49  ;;  %v539_v52 = vpack.c.bf16 %v423_v51, %v294_v50 }
  0xa4   :  { %587 = vst [vmem:[#allocation2 + $0x18] sm:$0xff] %v539_v52 }
  0xa6   :  { %v354_v53 = vpop.f32.mrf.mxu2 }
  0xa7   :  { %v483_v54 = vpop.f32.mrf.mxu3 }
  0xa8   :  { %v563_v57 = vpack.c.bf16 %v483_v54, %v354_v53  ;;  %v297_v58 = vpop.f32.mrf.mxu0 }
  0xa9   :  { %v426_v59 = vpop.f32.mrf.mxu1 }
  0xaa   :  { %611 = vst [vmem:[#allocation2 + $0xd8] sm:$0xff] %v563_v57  ;;  %v540_v60 = vpack.c.bf16 %v426_v59, %v297_v58 }
  0xab   :  { %772 = vmatmul.msk.bf16.gmra.mxu0 %vm205_vm0, %v820_v55  ;;  %784 = vmatmul.msk.bf16.gmra.mxu2 %vm205_vm0, %v832_v56 }
  0xac   :  { %588 = vst [vmem:[#allocation2 + $0x20] sm:$0xff] %v540_v60  ;;  %796 = vmatmul.msk.bf16.gmra.mxu1 %vm205_vm0, %v820_v55  ;;  %808 = vmatmul.msk.bf16.gmra.mxu3 %vm205_vm0, %v832_v56 }
  0xae   :  { %v357_v61 = vpop.f32.mrf.mxu2 }
  0xaf   :  { %v486_v62 = vpop.f32.mrf.mxu3 }
  0xb0   :  { %v564_v63 = vpack.c.bf16 %v486_v62, %v357_v61  ;;  %v299_v0 = vpop.f32.mrf.mxu0 }
  0xb1   :  { %v428_v1 = vpop.f32.mrf.mxu1 }
  0xb2   :  { %612 = vst [vmem:[#allocation2 + $0xe0] sm:$0xff] %v564_v63  ;;  %v541_v2 = vpack.c.bf16 %v428_v1, %v299_v0 }
  0xb4   :  { %589 = vst [vmem:[#allocation2 + $0x28] sm:$0xff] %v541_v2 }
  0xb6   :  { %v359_v3 = vpop.f32.mrf.mxu2 }
  0xb7   :  { %v488_v4 = vpop.f32.mrf.mxu3 }
  0xb8   :  { %v565_v7 = vpack.c.bf16 %v488_v4, %v359_v3  ;;  %v302_v8 = vpop.f32.mrf.mxu0 }
  0xb9   :  { %v431_v9 = vpop.f32.mrf.mxu1 }
  0xba   :  { %613 = vst [vmem:[#allocation2 + $0xe8] sm:$0xff] %v565_v7  ;;  %v542_v10 = vpack.c.bf16 %v431_v9, %v302_v8 }
  0xbb   :  { %773 = vmatmul.msk.bf16.gmra.mxu0 %vm205_vm0, %v821_v5  ;;  %785 = vmatmul.msk.bf16.gmra.mxu2 %vm205_vm0, %v833_v6 }
  0xbc   :  { %590 = vst [vmem:[#allocation2 + $0x30] sm:$0xff] %v542_v10  ;;  %797 = vmatmul.msk.bf16.gmra.mxu1 %vm205_vm0, %v821_v5  ;;  %809 = vmatmul.msk.bf16.gmra.mxu3 %vm205_vm0, %v833_v6 }
  0xbe   :  { %v362_v11 = vpop.f32.mrf.mxu2 }
  0xbf   :  { %v491_v12 = vpop.f32.mrf.mxu3 }
  0xc0   :  { %v566_v13 = vpack.c.bf16 %v491_v12, %v362_v11  ;;  %v304_v14 = vpop.f32.mrf.mxu0 }
  0xc1   :  { %v433_v15 = vpop.f32.mrf.mxu1 }
  0xc2   :  { %614 = vst [vmem:[#allocation2 + $0xf0] sm:$0xff] %v566_v13  ;;  %v543_v16 = vpack.c.bf16 %v433_v15, %v304_v14 }
  0xc4   :  { %591 = vst [vmem:[#allocation2 + $0x38] sm:$0xff] %v543_v16 }
  0xc6   :  { %v364_v17 = vpop.f32.mrf.mxu2 }
  0xc7   :  { %v493_v18 = vpop.f32.mrf.mxu3 }
  0xc8   :  { %v567_v19 = vpack.c.bf16 %v493_v18, %v364_v17  ;;  %v307_v20 = vpop.f32.mrf.mxu0 }
  0xc9   :  { %v436_v21 = vpop.f32.mrf.mxu1 }
  0xca   :  { %615 = vst [vmem:[#allocation2 + $0xf8] sm:$0xff] %v567_v19  ;;  %v544_v22 = vpack.c.bf16 %v436_v21, %v307_v20 }
  0xcc   :  { %592 = vst [vmem:[#allocation2 + $0x40] sm:$0xff] %v544_v22 }
  0xce   :  { %v367_v23 = vpop.f32.mrf.mxu2 }
  0xcf   :  { %v496_v24 = vpop.f32.mrf.mxu3 }
  0xd0   :  { %v568_v25 = vpack.c.bf16 %v496_v24, %v367_v23  ;;  %v309_v26 = vpop.f32.mrf.mxu0 }
  0xd1   :  { %v438_v27 = vpop.f32.mrf.mxu1 }
  0xd2   :  { %616 = vst [vmem:[#allocation2 + $0x100] sm:$0xff] %v568_v25  ;;  %v545_v28 = vpack.c.bf16 %v438_v27, %v309_v26 }
  0xd4   :  { %593 = vst [vmem:[#allocation2 + $0x48] sm:$0xff] %v545_v28 }
  0xd6   :  { %v369_v29 = vpop.f32.mrf.mxu2 }
  0xd7   :  { %v498_v30 = vpop.f32.mrf.mxu3 }
  0xd8   :  { %v569_v31 = vpack.c.bf16 %v498_v30, %v369_v29  ;;  %v312_v32 = vpop.f32.mrf.mxu0 }
  0xd9   :  { %v441_v33 = vpop.f32.mrf.mxu1 }
  0xda   :  { %617 = vst [vmem:[#allocation2 + $0x108] sm:$0xff] %v569_v31  ;;  %v546_v34 = vpack.c.bf16 %v441_v33, %v312_v32 }
  0xdc   :  { %594 = vst [vmem:[#allocation2 + $0x50] sm:$0xff] %v546_v34 }
  0xde   :  { %v372_v35 = vpop.f32.mrf.mxu2 }
  0xdf   :  { %v501_v36 = vpop.f32.mrf.mxu3 }
  0xe0   :  { %v570_v37 = vpack.c.bf16 %v501_v36, %v372_v35  ;;  %v314_v38 = vpop.f32.mrf.mxu0 }
  0xe1   :  { %v443_v39 = vpop.f32.mrf.mxu1 }
  0xe2   :  { %618 = vst [vmem:[#allocation2 + $0x110] sm:$0xff] %v570_v37  ;;  %v547_v40 = vpack.c.bf16 %v443_v39, %v314_v38 }
  0xe4   :  { %595 = vst [vmem:[#allocation2 + $0x58] sm:$0xff] %v547_v40 }
  0xe6   :  { %v374_v41 = vpop.f32.mrf.mxu2 }
  0xe7   :  { %v503_v42 = vpop.f32.mrf.mxu3 }
  0xe8   :  { %v571_v43 = vpack.c.bf16 %v503_v42, %v374_v41  ;;  %v317_v44 = vpop.f32.mrf.mxu0 }
  0xe9   :  { %v446_v45 = vpop.f32.mrf.mxu1 }
  0xea   :  { %619 = vst [vmem:[#allocation2 + $0x118] sm:$0xff] %v571_v43  ;;  %v548_v46 = vpack.c.bf16 %v446_v45, %v317_v44 }
  0xec   :  { %596 = vst [vmem:[#allocation2 + $0x60] sm:$0xff] %v548_v46 }
  0xee   :  { %v377_v47 = vpop.f32.mrf.mxu2 }
  0xef   :  { %v506_v48 = vpop.f32.mrf.mxu3 }
  0xf0   :  { %v572_v49 = vpack.c.bf16 %v506_v48, %v377_v47  ;;  %v319_v50 = vpop.f32.mrf.mxu0 }
  0xf1   :  { %v448_v51 = vpop.f32.mrf.mxu1 }
  0xf2   :  { %620 = vst [vmem:[#allocation2 + $0x120] sm:$0xff] %v572_v49  ;;  %v549_v52 = vpack.c.bf16 %v448_v51, %v319_v50 }
  0xf4   :  { %597 = vst [vmem:[#allocation2 + $0x68] sm:$0xff] %v549_v52 }
  0xf6   :  { %v379_v53 = vpop.f32.mrf.mxu2 }
  0xf7   :  { %v508_v54 = vpop.f32.mrf.mxu3 }
  0xf8   :  { %v573_v55 = vpack.c.bf16 %v508_v54, %v379_v53  ;;  %v322_v56 = vpop.f32.mrf.mxu0 }
  0xf9   :  { %v451_v57 = vpop.f32.mrf.mxu1 }
  0xfa   :  { %621 = vst [vmem:[#allocation2 + $0x128] sm:$0xff] %v573_v55  ;;  %v550_v58 = vpack.c.bf16 %v451_v57, %v322_v56 }
  0xfc   :  { %598 = vst [vmem:[#allocation2 + $0x70] sm:$0xff] %v550_v58 }
  0xfe   :  { %v382_v59 = vpop.f32.mrf.mxu2 }
  0xff   :  { %v511_v60 = vpop.f32.mrf.mxu3 }
 0x100   :  { %v574_v61 = vpack.c.bf16 %v511_v60, %v382_v59  ;;  %v324_v62 = vpop.f32.mrf.mxu0 }
 0x101   :  { %v453_v63 = vpop.f32.mrf.mxu1 }
 0x102   :  { %622 = vst [vmem:[#allocation2 + $0x130] sm:$0xff] %v574_v61  ;;  %v551_v0 = vpack.c.bf16 %v453_v63, %v324_v62 }
 0x104   :  { %599 = vst [vmem:[#allocation2 + $0x78] sm:$0xff] %v551_v0 }
 0x106   :  { %v384_v1 = vpop.f32.mrf.mxu2 }
 0x107   :  { %v513_v2 = vpop.f32.mrf.mxu3 }
 0x108   :  { %v575_v3 = vpack.c.bf16 %v513_v2, %v384_v1  ;;  %v327_v4 = vpop.f32.mrf.mxu0 }
 0x109   :  { %v456_v5 = vpop.f32.mrf.mxu1 }
 0x10a   :  { %623 = vst [vmem:[#allocation2 + $0x138] sm:$0xff] %v575_v3  ;;  %v552_v6 = vpack.c.bf16 %v456_v5, %v327_v4 }
 0x10c   :  { %600 = vst [vmem:[#allocation2 + $0x80] sm:$0xff] %v552_v6 }
 0x10e   :  { %v387_v7 = vpop.f32.mrf.mxu2 }
 0x10f   :  { %v516_v8 = vpop.f32.mrf.mxu3 }
 0x110   :  { %v576_v9 = vpack.c.bf16 %v516_v8, %v387_v7  ;;  %v329_v10 = vpop.f32.mrf.mxu0 }
 0x111   :  { %v458_v11 = vpop.f32.mrf.mxu1 }
 0x112   :  { %624 = vst [vmem:[#allocation2 + $0x140] sm:$0xff] %v576_v9  ;;  %v553_v12 = vpack.c.bf16 %v458_v11, %v329_v10 }
 0x114   :  { %601 = vst [vmem:[#allocation2 + $0x88] sm:$0xff] %v553_v12 }
 0x116   :  { %v389_v13 = vpop.f32.mrf.mxu2 }
 0x117   :  { %v518_v14 = vpop.f32.mrf.mxu3 }
 0x118   :  { %v577_v15 = vpack.c.bf16 %v518_v14, %v389_v13  ;;  %v332_v16 = vpop.f32.mrf.mxu0 }
 0x119   :  { %v461_v17 = vpop.f32.mrf.mxu1 }
 0x11a   :  { %625 = vst [vmem:[#allocation2 + $0x148] sm:$0xff] %v577_v15  ;;  %v554_v18 = vpack.c.bf16 %v461_v17, %v332_v16 }
 0x11c   :  { %602 = vst [vmem:[#allocation2 + $0x90] sm:$0xff] %v554_v18 }
 0x11e   :  { %v392_v19 = vpop.f32.mrf.mxu2 }
 0x11f   :  { %v521_v20 = vpop.f32.mrf.mxu3 }
 0x120   :  { %v578_v21 = vpack.c.bf16 %v521_v20, %v392_v19  ;;  %v334_v22 = vpop.f32.mrf.mxu0 }
 0x121   :  { %v463_v23 = vpop.f32.mrf.mxu1 }
 0x122   :  { %626 = vst [vmem:[#allocation2 + $0x150] sm:$0xff] %v578_v21  ;;  %v555_v24 = vpack.c.bf16 %v463_v23, %v334_v22 }
 0x124   :  { %603 = vst [vmem:[#allocation2 + $0x98] sm:$0xff] %v555_v24 }
 0x126   :  { %v394_v25 = vpop.f32.mrf.mxu2 }
 0x127   :  { %v523_v26 = vpop.f32.mrf.mxu3 }
 0x128   :  { %v579_v27 = vpack.c.bf16 %v523_v26, %v394_v25  ;;  %v337_v28 = vpop.f32.mrf.mxu0 }
 0x129   :  { %v466_v29 = vpop.f32.mrf.mxu1 }
 0x12a   :  { %627 = vst [vmem:[#allocation2 + $0x158] sm:$0xff] %v579_v27  ;;  %v556_v30 = vpack.c.bf16 %v466_v29, %v337_v28 }
 0x12c   :  { %604 = vst [vmem:[#allocation2 + $0xa0] sm:$0xff] %v556_v30 }
 0x12e   :  { %v397_v31 = vpop.f32.mrf.mxu2 }
 0x12f   :  { %v526_v32 = vpop.f32.mrf.mxu3 }
 0x130   :  { %v580_v33 = vpack.c.bf16 %v526_v32, %v397_v31  ;;  %v339_v34 = vpop.f32.mrf.mxu0 }
 0x131   :  { %v468_v35 = vpop.f32.mrf.mxu1 }
 0x132   :  { %628 = vst [vmem:[#allocation2 + $0x160] sm:$0xff] %v580_v33  ;;  %v557_v36 = vpack.c.bf16 %v468_v35, %v339_v34 }
 0x134   :  { %605 = vst [vmem:[#allocation2 + $0xa8] sm:$0xff] %v557_v36 }
 0x136   :  { %v399_v37 = vpop.f32.mrf.mxu2 }
 0x137   :  { %v528_v38 = vpop.f32.mrf.mxu3 }
 0x138   :  { %v581_v39 = vpack.c.bf16 %v528_v38, %v399_v37  ;;  %v342_v40 = vpop.f32.mrf.mxu0 }
 0x139   :  { %v471_v41 = vpop.f32.mrf.mxu1 }
 0x13a   :  { %629 = vst [vmem:[#allocation2 + $0x168] sm:$0xff] %v581_v39  ;;  %v558_v42 = vpack.c.bf16 %v471_v41, %v342_v40 }
 0x13c   :  { %606 = vst [vmem:[#allocation2 + $0xb0] sm:$0xff] %v558_v42 }
 0x13e   :  { %v402_v43 = vpop.f32.mrf.mxu2 }
 0x13f   :  { %v531_v44 = vpop.f32.mrf.mxu3 }
 0x140   :  { %v582_v45 = vpack.c.bf16 %v531_v44, %v402_v43  ;;  %v344_v46 = vpop.f32.mrf.mxu0 }
 0x141   :  { %v473_v47 = vpop.f32.mrf.mxu1 }
 0x142   :  { %630 = vst [vmem:[#allocation2 + $0x170] sm:$0xff] %v582_v45  ;;  %v559_v48 = vpack.c.bf16 %v473_v47, %v344_v46 }
 0x144   :  { %607 = vst [vmem:[#allocation2 + $0xb8] sm:$0xff] %v559_v48 }
 0x146   :  { %v404_v49 = vpop.f32.mrf.mxu2 }
 0x147   :  { %v533_v50 = vpop.f32.mrf.mxu3 }
 0x148   :  { %v583_v51 = vpack.c.bf16 %v533_v50, %v404_v49 }
 0x14a   :  { %631 = vst [vmem:[#allocation2 + $0x178] sm:$0xff] %v583_v51 }
 0x14b   :  { %644 = dma.vmem_to_hbm [thread:$0]  %s637_s15, 6144, %s639_s18, [#allocation3], %s872_s19, %s872_s19, %s873_s20  }
 0x14c   :  { %869 = dma.done.wait [#allocation3], 6144  }
 0x14d   :  { %870 = vsyncadd [#allocation3], 4294961152 }
 0x14e   :  { %649 = vsyncpa [#allocation3], 1 }

</bundles_post_ra>
